<compile_context>
chip_gen: v5e
topology: v5e:2x2
jax: 0.10.0
libtpu: 0.0.40
codegen_flags: <defaults>
</compile_context>

<pallas_src>
import jax
import jax.numpy as jnp
from jax import lax
from jax.experimental import pallas as pl
from jax.experimental.pallas import tpu as pltpu

EPS = 1e-5


def _fused_conv(x, mask, w, b_conv, c_out, precision):
    """k=3 'same' Conv1d as one stacked MXU dot + lane rolls, then ReLU.

    x:      (Cin, N) f32, N = Bt*L lane-packed positions
    mask:   (2, N)  f32, row 0 kills the l-1 tap at sample starts,
                         row 1 kills the l+1 tap at sample ends
    w:      (K*Cout, Cin) stacked [W_tap0; W_tap1; W_tap2; (W_res)]
    b_conv: (Cout, 1)
    Returns (y, pre): the raw stacked dot result and the ReLU'd conv output.
    """
    n = x.shape[1]
    y = jnp.dot(w, x, preferred_element_type=jnp.float32, precision=precision)
    y0 = y[0:c_out]
    y1 = y[c_out:2 * c_out]
    y2 = y[2 * c_out:3 * c_out]
    from_prev = pltpu.roll(y0, shift=1, axis=1) * mask[0:1, :]
    from_next = pltpu.roll(y2, shift=n - 1, axis=1) * mask[1:2, :]
    pre = jnp.maximum(from_prev + y1 + from_next + b_conv, 0.0)
    return y, pre


def _make_stats_kernel(c_out, precision):
    def kernel(x_ref, mask_ref, w_ref, bconv_ref, sum_ref, ssq_ref):
        x = x_ref[...].astype(jnp.float32)
        _, pre = _fused_conv(x, mask_ref[...], w_ref[...], bconv_ref[...],
                             c_out, precision)
        sum_ref[...] = jnp.sum(pre, axis=1, keepdims=True)
        ssq_ref[...] = jnp.sum(pre * pre, axis=1, keepdims=True)
    return kernel


def _make_apply_kernel(c_out, has_res, precision):
    if has_res:
        def kernel(x_ref, mask_ref, add_ref, w_ref, bconv_ref, scale_ref,
                   bres_ref, out_ref):
            x = x_ref[...].astype(jnp.float32)
            y, pre = _fused_conv(x, mask_ref[...], w_ref[...], bconv_ref[...],
                                 c_out, precision)
            h = pre * scale_ref[...] + add_ref[...]
            res = y[3 * c_out:4 * c_out] + bres_ref[...]     # fused 1x1 conv
            out_ref[...] = jnp.maximum(h + res, 0.0).astype(out_ref.dtype)
    else:
        def kernel(x_ref, mask_ref, add_ref, w_ref, bconv_ref, scale_ref,
                   out_ref):
            x = x_ref[...].astype(jnp.float32)
            _, pre = _fused_conv(x, mask_ref[...], w_ref[...], bconv_ref[...],
                                 c_out, precision)
            h = pre * scale_ref[...] + add_ref[...]
            out_ref[...] = jnp.maximum(h + x, 0.0).astype(out_ref.dtype)
    return kernel


def _vmem_limit_bytes():
    """Per-generation VMEM budget: ~3/4 of physical, capped at 100 MiB."""
    try:
        cap = int(pltpu.get_tpu_info().vmem_capacity_bytes)
    except Exception:
        cap = 64 * 1024 * 1024            # conservative (v7x-sized) fallback
    return max(32 * 1024 * 1024, min((cap * 3) // 4, 100 * 1024 * 1024))


def _pick_batch_block(B, L, c_in, c_out, vmem_limit):
    """Largest Bt (divisor of B) whose lane-packed block obeys the (8,128)
    tiling rule and fits the VMEM budget (double-buffered f32 blocks)."""
    per_pos = (c_in + 2 * c_out + 2) * 4 * 2
    budget = max(vmem_limit // 2, 1)
    cands = [bt for bt in range(1, B + 1)
             if B % bt == 0 and (bt == B or (bt * L) % 128 == 0)]
    fitting = [bt for bt in cands if bt * L * per_pos <= budget]
    return max(fitting) if fitting else min(cands)


def residual_block_forward(x, t_emb, params, epitope=None, *, precision=None):
    """x: (B, Cin, L), t_emb: (B, T), epitope: (B, 1024) or None -> (B, Cout, L)."""
    B, c_in, L = x.shape
    c_out = params["b_conv"].shape[0]
    has_res = "w_res" in params
    has_epi = epitope is not None
    if not has_res and c_in != c_out:
        raise ValueError("identity residual requires in_channels == out_channels")

    f32 = jnp.float32
    N = B * L

    # Layout plumbing: channels on sublanes, batch*length packed on lanes.
    x_packed = jnp.transpose(x, (1, 0, 2)).reshape(c_in, N)

    # Per-sample conv boundary masks (precomputed: no in-kernel integer mod).
    pos = jnp.arange(N) % L
    mask = jnp.stack([pos != 0, pos != L - 1], axis=0).astype(f32)     # (2, N)

    w_conv = params["w_conv"].astype(f32)                              # (Cout, Cin, 3)
    w_taps = jnp.concatenate(
        [w_conv[:, :, 0], w_conv[:, :, 1], w_conv[:, :, 2]], axis=0)   # (3C, Cin)
    w_apply = (jnp.concatenate([w_taps, params["w_res"][:, :, 0].astype(f32)],
                               axis=0) if has_res else w_taps)
    b_conv = params["b_conv"].astype(f32)[:, None]                     # (Cout, 1)

    vmem_limit = _vmem_limit_bytes()
    bt = _pick_batch_block(B, L, c_in, c_out, vmem_limit)
    nb = B // bt
    nlane = bt * L

    cparams = pltpu.CompilerParams(dimension_semantics=("parallel",),
                                   vmem_limit_bytes=vmem_limit)

    def packed(rows):
        return pl.BlockSpec((rows, nlane), lambda b: (0, b))

    def resident(a):
        nd = a.ndim
        return pl.BlockSpec(a.shape, lambda b, _nd=nd: (0,) * _nd)

    # ---- pass 1 (batch-parallel): conv -> ReLU -> per-block BN partial sums.
    sums, ssqs = pl.pallas_call(
        _make_stats_kernel(c_out, precision),
        out_shape=(jax.ShapeDtypeStruct((nb, c_out, 1), f32),
                   jax.ShapeDtypeStruct((nb, c_out, 1), f32)),
        grid=(nb,),
        in_specs=[packed(c_in), packed(2), resident(w_taps), resident(b_conv)],
        out_specs=(pl.BlockSpec((None, c_out, 1), lambda b: (b, 0, 0)),
                   pl.BlockSpec((None, c_out, 1), lambda b: (b, 0, 0))),
        compiler_params=cparams,
    )(x_packed, mask, w_taps, b_conv)

    # ---- tiny XLA reduction: fold BatchNorm into per-channel scale/shift.
    n_elems = float(N)
    mean = jnp.sum(sums, axis=0)[:, 0] / n_elems
    var = jnp.maximum(jnp.sum(ssqs, axis=0)[:, 0] / n_elems - mean * mean, 0.0)
    scale = params["gamma"].astype(f32) * lax.rsqrt(var + EPS)
    shift = params["beta"].astype(f32) - mean * scale

    # ---- hoisted time / epitope MLPs: one batched matmul each (wrapper/XLA).
    t_act = jnp.maximum(
        jnp.dot(t_emb.astype(f32), params["w_time"].astype(f32).T,
                precision=lax.Precision.HIGHEST)
        + params["b_time"].astype(f32), 0.0)                           # (B, Cout)
    add = shift[None, :] + t_act
    if has_epi:
        e_act = jnp.maximum(
            jnp.dot(epitope.astype(f32), params["w_epi"].astype(f32).T,
                    precision=lax.Precision.HIGHEST)
            + params["b_epi"].astype(f32), 0.0)
        add = add + e_act
    add_packed = jnp.repeat(add.T, L, axis=1)                          # (Cout, B*L)
    scale_col = scale[:, None]                                         # (Cout, 1)

    # ---- pass 2 (batch-parallel): recompute conv, apply BN/emb/residual/ReLU.
    apply_args = [x_packed, mask, add_packed, w_apply, b_conv, scale_col]
    apply_specs = [packed(c_in), packed(2), packed(c_out),
                   resident(w_apply), resident(b_conv), resident(scale_col)]
    if has_res:
        b_res = params["b_res"].astype(f32)[:, None]
        apply_args.append(b_res)
        apply_specs.append(resident(b_res))

    out_packed = pl.pallas_call(
        _make_apply_kernel(c_out, has_res, precision),
        out_shape=jax.ShapeDtypeStruct((c_out, N), x.dtype),
        grid=(nb,),
        in_specs=apply_specs,
        out_specs=pl.BlockSpec((c_out, nlane), lambda b: (0, b)),
        compiler_params=cparams,
    )(*apply_args)

    return jnp.transpose(out_packed.reshape(c_out, B, L), (1, 0, 2))


def reference_forward(x, t_emb, params, epitope=None):
    """Pure-JAX (f32, HIGHEST precision) replica of the PyTorch forward."""
    prec = lax.Precision.HIGHEST
    h = lax.conv_general_dilated(
        x, params["w_conv"], (1,), ((1, 1),),
        dimension_numbers=("NCH", "OIH", "NCH"),
        precision=prec) + params["b_conv"][None, :, None]
    h = jnp.maximum(h, 0.0)
    mean = jnp.mean(h, axis=(0, 2), keepdims=True)
    var = jnp.mean((h - mean) ** 2, axis=(0, 2), keepdims=True)
    h = (h - mean) / jnp.sqrt(var + EPS) * params["gamma"][None, :, None] \
        + params["beta"][None, :, None]
    t_act = jnp.maximum(
        jnp.dot(t_emb, params["w_time"].T, precision=prec) + params["b_time"], 0.0)
    if epitope is not None:
        e_act = jnp.maximum(
            jnp.dot(epitope, params["w_epi"].T, precision=prec) + params["b_epi"], 0.0)
        h = h + e_act[:, :, None]
    h = h + t_act[:, :, None]
    if "w_res" in params:
        res = lax.conv_general_dilated(
            x, params["w_res"], (1,), ((0, 0),),
            dimension_numbers=("NCH", "OIH", "NCH"),
            precision=prec) + params["b_res"][None, :, None]
    else:
        res = x
    return jnp.maximum(h + res, 0.0)


if __name__ == "__main__":
    key = jax.random.PRNGKey(0)
    ks = jax.random.split(key, 16)

    # Tolerance sized for DEFAULT (single-bf16-pass) MXU precision on the
    # in-kernel conv dot; any structural bug would be orders of magnitude larger.
    ATOL = RTOL = 2e-2

    # Case 1: in_channels != out_channels (1x1-conv residual) + epitope branch.
    B, Cin, Cout, L, T, DEP = 2, 4, 8, 16, 32, 1024
    params = {
        "w_conv": 0.2 * jax.random.normal(ks[0], (Cout, Cin, 3), jnp.float32),
        "b_conv": 0.1 * jax.random.normal(ks[1], (Cout,), jnp.float32),
        "gamma": 1.0 + 0.1 * jax.random.normal(ks[2], (Cout,), jnp.float32),
        "beta": 0.1 * jax.random.normal(ks[3], (Cout,), jnp.float32),
        "w_time": 0.2 * jax.random.normal(ks[4], (Cout, T), jnp.float32),
        "b_time": 0.1 * jax.random.normal(ks[5], (Cout,), jnp.float32),
        "w_epi": 0.05 * jax.random.normal(ks[6], (Cout, DEP), jnp.float32),
        "b_epi": 0.1 * jax.random.normal(ks[7], (Cout,), jnp.float32),
        "w_res": 0.2 * jax.random.normal(ks[8], (Cout, Cin, 1), jnp.float32),
        "b_res": 0.1 * jax.random.normal(ks[9], (Cout,), jnp.float32),
    }
    x = jax.random.normal(ks[10], (B, Cin, L), jnp.float32)
    t_emb = jax.random.normal(ks[11], (B, T), jnp.float32)
    epi = jax.random.normal(ks[12], (B, DEP), jnp.float32)

    out = jax.block_until_ready(residual_block_forward(x, t_emb, params, epi))
    assert out.shape == (B, Cout, L), out.shape
    ref = reference_forward(x, t_emb, params, epi)
    if not jnp.allclose(out, ref, atol=ATOL, rtol=RTOL):
        raise AssertionError(
            f"case1 mismatch: max abs diff = {float(jnp.max(jnp.abs(out - ref)))}")

    # Case 2: identity residual (in == out channels), no epitope.
    C2 = 8
    params2 = {
        "w_conv": 0.2 * jax.random.normal(ks[13], (C2, C2, 3), jnp.float32),
        "b_conv": 0.1 * jax.random.normal(ks[1], (C2,), jnp.float32),
        "gamma": 1.0 + 0.1 * jax.random.normal(ks[2], (C2,), jnp.float32),
        "beta": 0.1 * jax.random.normal(ks[3], (C2,), jnp.float32),
        "w_time": 0.2 * jax.random.normal(ks[4], (C2, T), jnp.float32),
        "b_time": 0.1 * jax.random.normal(ks[5], (C2,), jnp.float32),
    }
    x2 = jax.random.normal(ks[14], (B, C2, L), jnp.float32)
    out2 = jax.block_until_ready(residual_block_forward(x2, t_emb, params2, None))
    assert out2.shape == (B, C2, L), out2.shape
    ref2 = reference_forward(x2, t_emb, params2, None)
    if not jnp.allclose(out2, ref2, atol=ATOL, rtol=RTOL):
        raise AssertionError(
            f"case2 mismatch: max abs diff = {float(jnp.max(jnp.abs(out2 - ref2)))}")

    print("KERNEL_OK")
</pallas_src>

<mosaic_0001>
module attributes {stable_mosaic.version = 11 : i64} {
  func.func @kernel(%arg0: i32, %arg1: memref<4x32xf32, #tpu.memory_space<vmem>>, %arg2: memref<2x32xf32, #tpu.memory_space<vmem>>, %arg3: memref<24x4xf32, #tpu.memory_space<vmem>>, %arg4: memref<8x1xf32, #tpu.memory_space<vmem>>, %arg5: memref<1x8x1xf32, #tpu.memory_space<vmem>>, %arg6: memref<1x8x1xf32, #tpu.memory_space<vmem>>) attributes {dimension_semantics = [#tpu.dimension_semantics<parallel>], iteration_bounds = array<i64: 1>, scalar_prefetch = 0 : i64, scratch_operands = 0 : i64, tpu.core_type = #tpu.core_type<tc>, window_params = [{transform_indices = @transform_0, window_bounds = array<i64: 4, 32>}, {transform_indices = @transform_1, window_bounds = array<i64: 2, 32>}, {pipeline_mode = #tpu.pipeline_mode<synchronous>, transform_indices = @transform_2, window_bounds = array<i64: 24, 4>}, {pipeline_mode = #tpu.pipeline_mode<synchronous>, transform_indices = @transform_3, window_bounds = array<i64: 8, 1>}, {transform_indices = @transform_4, window_bounds = array<i64: 1, 8, 1>}, {transform_indices = @transform_5, window_bounds = array<i64: 1, 8, 1>}]} {
    %c0 = arith.constant 0 : index
    %c0_0 = arith.constant 0 : index
    %0 = vector.load %arg1[%c0, %c0_0] : memref<4x32xf32, #tpu.memory_space<vmem>>, vector<4x32xf32>
    %c0_1 = arith.constant 0 : index
    %c0_2 = arith.constant 0 : index
    %1 = vector.load %arg2[%c0_1, %c0_2] : memref<2x32xf32, #tpu.memory_space<vmem>>, vector<2x32xf32>
    %c0_3 = arith.constant 0 : index
    %c0_4 = arith.constant 0 : index
    %2 = vector.load %arg3[%c0_3, %c0_4] : memref<24x4xf32, #tpu.memory_space<vmem>>, vector<24x4xf32>
    %c0_5 = arith.constant 0 : index
    %c0_6 = arith.constant 0 : index
    %3 = vector.load %arg4[%c0_5, %c0_6] : memref<8x1xf32, #tpu.memory_space<vmem>>, vector<8x1xf32>
    %cst = arith.constant dense<0.000000e+00> : vector<24x32xf32>
    %4 = tpu.matmul %2, %0, %cst {dimension_numbers = #tpu.dot_dimension_numbers<[1], [0], [0], [1], [0, 0, 1, 1], [], []>} : vector<24x4xf32>, vector<4x32xf32>, vector<24x32xf32> -> vector<24x32xf32>
    %5 = vector.extract_strided_slice %4 {offsets = [0, 0], sizes = [8, 32], strides = [1, 1]} : vector<24x32xf32> to vector<8x32xf32>
    %6 = vector.extract_strided_slice %4 {offsets = [8, 0], sizes = [8, 32], strides = [1, 1]} : vector<24x32xf32> to vector<8x32xf32>
    %7 = vector.extract_strided_slice %4 {offsets = [16, 0], sizes = [8, 32], strides = [1, 1]} : vector<24x32xf32> to vector<8x32xf32>
    %c1_i32 = arith.constant 1 : i32
    %8 = tpu.dynamic_rotate %5 by %c1_i32 dim 1 : vector<8x32xf32>, i32 -> vector<8x32xf32>
    %9 = vector.extract_strided_slice %1 {offsets = [0, 0], sizes = [1, 32], strides = [1, 1]} : vector<2x32xf32> to vector<1x32xf32>
    %10 = vector.broadcast %9 : vector<1x32xf32> to vector<8x32xf32>
    %11 = arith.mulf %8, %10 : vector<8x32xf32>
    %c31_i32 = arith.constant 31 : i32
    %12 = tpu.dynamic_rotate %7 by %c31_i32 dim 1 : vector<8x32xf32>, i32 -> vector<8x32xf32>
    %13 = vector.extract_strided_slice %1 {offsets = [1, 0], sizes = [1, 32], strides = [1, 1]} : vector<2x32xf32> to vector<1x32xf32>
    %14 = vector.broadcast %13 : vector<1x32xf32> to vector<8x32xf32>
    %15 = arith.mulf %12, %14 : vector<8x32xf32>
    %16 = arith.addf %11, %6 : vector<8x32xf32>
    %17 = arith.addf %16, %15 : vector<8x32xf32>
    %18 = vector.broadcast %3 : vector<8x1xf32> to vector<8x32xf32>
    %19 = arith.addf %17, %18 : vector<8x32xf32>
    %cst_7 = arith.constant 0.000000e+00 : f32
    %20 = vector.broadcast %cst_7 : f32 to vector<8x32xf32>
    %21 = arith.maximumf %19, %20 : vector<8x32xf32>
    %cst_8 = arith.constant dense<0.000000e+00> : vector<8xf32>
    %22 = vector.multi_reduction <add>, %21, %cst_8 [1] : vector<8x32xf32> to vector<8xf32>
    %23 = vector.shape_cast %22 : vector<8xf32> to vector<8x1xf32>
    %c0_9 = arith.constant 0 : index
    %c0_10 = arith.constant 0 : index
    %c0_11 = arith.constant 0 : index
    %24 = vector.load %arg5[%c0_9, %c0_10, %c0_11] : memref<1x8x1xf32, #tpu.memory_space<vmem>>, vector<1x8x1xf32>
    %25 = vector.shape_cast %24 : vector<1x8x1xf32> to vector<8x1xf32>
    %26 = vector.shape_cast %23 : vector<8x1xf32> to vector<1x8x1xf32>
    tpu.vector_store %arg5[%c0_9, %c0_10, %c0_11], %26 {strides = array<i32>} : memref<1x8x1xf32, #tpu.memory_space<vmem>>, vector<1x8x1xf32>,
    %27 = arith.mulf %21, %21 : vector<8x32xf32>
    %cst_12 = arith.constant dense<0.000000e+00> : vector<8xf32>
    %28 = vector.multi_reduction <add>, %27, %cst_12 [1] : vector<8x32xf32> to vector<8xf32>
    %29 = vector.shape_cast %28 : vector<8xf32> to vector<8x1xf32>
    %c0_13 = arith.constant 0 : index
    %c0_14 = arith.constant 0 : index
    %c0_15 = arith.constant 0 : index
    %30 = vector.load %arg6[%c0_13, %c0_14, %c0_15] : memref<1x8x1xf32, #tpu.memory_space<vmem>>, vector<1x8x1xf32>
    %31 = vector.shape_cast %30 : vector<1x8x1xf32> to vector<8x1xf32>
    %32 = vector.shape_cast %29 : vector<8x1xf32> to vector<1x8x1xf32>
    tpu.vector_store %arg6[%c0_13, %c0_14, %c0_15], %32 {strides = array<i32>} : memref<1x8x1xf32, #tpu.memory_space<vmem>>, vector<1x8x1xf32>,
    return
  }
  func.func @transform_0(%arg0: i32) -> (i32, i32) {
    %c0_i32 = arith.constant 0 : i32
    %c0_i32_0 = arith.constant 0 : i32
    return %c0_i32, %arg0 : i32, i32
  }
  func.func @transform_1(%arg0: i32) -> (i32, i32) {
    %c0_i32 = arith.constant 0 : i32
    %c0_i32_0 = arith.constant 0 : i32
    return %c0_i32, %arg0 : i32, i32
  }
  func.func @transform_2(%arg0: i32) -> (i32, i32) {
    %c0_i32 = arith.constant 0 : i32
    %c0_i32_0 = arith.constant 0 : i32
    %c0_i32_1 = arith.constant 0 : i32
    return %c0_i32, %c0_i32_0 : i32, i32
  }
  func.func @transform_3(%arg0: i32) -> (i32, i32) {
    %c0_i32 = arith.constant 0 : i32
    %c0_i32_0 = arith.constant 0 : i32
    %c0_i32_1 = arith.constant 0 : i32
    return %c0_i32, %c0_i32_0 : i32, i32
  }
  func.func @transform_4(%arg0: i32) -> (i32, i32, i32) {
    %c0_i32 = arith.constant 0 : i32
    %c0_i32_0 = arith.constant 0 : i32
    %c0_i32_1 = arith.constant 0 : i32
    return %arg0, %c0_i32, %c0_i32_0 : i32, i32, i32
  }
  func.func @transform_5(%arg0: i32) -> (i32, i32, i32) {
    %c0_i32 = arith.constant 0 : i32
    %c0_i32_0 = arith.constant 0 : i32
    %c0_i32_1 = arith.constant 0 : i32
    return %arg0, %c0_i32, %c0_i32_0 : i32, i32, i32
  }
}

</mosaic_0001>

<bundles_post_ra>
// kernel: tpu_custom_call.1
= control target key start
LH: loop header
LB: loop body
LE: loop exit
PB: predicated region body
PF: predicated region fallthrough
CT: control target
= control target key end

     0   :  { %vm35_vm0 = vcmask 1043456   ;;  %vm25_vm1 = vcmask 31744   ;;  %s149_s26 = smov 31   ;;  %vm65_vm2 = vcmask 1047808   ;;  %v151_v15 = vmov 0   ;;  %s212_s0 = inlined_call_operand.vmem [shape: f32[4,32], index: 0, kind: input, shape index: {}]   ;;  %s213_s2 = inlined_call_operand.vmem [shape: f32[24,4], index: 2, kind: input, shape index: {}]   ;;  %s214_s1 = inlined_call_operand.vmem [shape: f32[2,32], index: 1, kind: input, shape index: {}]   ;;  %s215_s3 = inlined_call_operand.vmem [shape: f32[8,1], index: 3, kind: input, shape index: {}]   ;;  %s216_s4 = inlined_call_operand.vmem [shape: f32[1,8,1], index: 4, kind: output, shape index: {0}]   ;;  %s217_s5 = inlined_call_operand.vmem [shape: f32[1,8,1], index: 5, kind: output, shape index: {1}]  }
   0x1   :  { %v19_v0 = vld [vmem:[%s212_s0] sm:$0xf]  ;;  %v23_v1 = vld [vmem:[%s213_s2 + $0x10] sm:$0xff]  ;;  %v22_v3 = vld [vmem:[%s213_s2 + $0x8] sm:$0xff]  ;;  %s148_s0 = smov 32   ;;  %146 = vset.pattern.permute.xlu2 %v151_v15  ;;  %147 = vset.pattern.permute.xlu0 %v151_v15  ;;  %vm111_vm3 = vcmask 261120  }
   0x2   :  { %v21_v2 = vld [vmem:[%s213_s2] sm:$0xff]  ;;  %139 = vmatpush.msk.msra.mxu2 %vm35_vm0, %v19_v0  ;;  %134 = vmatpush.msk.msra.mxu0 %vm35_vm0, %v19_v0  ;;  %s150_s2 = smov 1   ;;  %vm115_vm4 = vcmask 7168  }
   0x3   :  { %137 = vmatmul.msk.f32.vlgmr.msra.gmra.mxu2 %vm25_vm1, %v23_v1  ;;  %135 = vmatmul.msk.f32.vlgmr.msra.gmra.mxu0 %vm25_vm1, %v21_v2  ;;  %v20_v9 = vld [vmem:[%s214_s1] sm:$0x3]  ;;  %s152_s1 = smov 30  }
   0x4   :  { %138 = vmatpush.msk.msra.mxu1 %vm35_vm0, %v19_v0  ;;  %v84_v10 = vperm.slane %v20_v9, 1  ;;  %v72_v13 = vperm.slane %v20_v9, 0  ;;  %v24_v14 = vld [vmem:[%s215_s3] sm:$0xff]  ;;  %s153_s3 = smov 97  }
   0x5   :  { %136 = vmatmul.msk.f32.vlgmr.msra.gmra.mxu1 %vm25_vm1, %v22_v3 }
  0x80   :  { %v56_v5 = vpop.f32.mrf.mxu0 }
  0x82   :  { %v59_v6 = vpop.f32.mrf.mxu1 }
  0x86   :  { %v62_v4 = vpop.f32.mrf.mxu2 }
  0x87   :  { %78 = vrot.lane.b32.xlu0 %v62_v4, %s148_s0 }
  0x8f   :  { %66 = vrot.lane.b32.xlu0 %v56_v5, %s148_s0 }
  0x97   :  { %91 = vrot.lane.b32.xlu0 %v59_v6, %s149_s26 }
  0xf9   :  { %v79_v7 = vpop.permute.xlu0 %78 }
  0xfa   :  { %v80_v8 = vsel %vm65_vm2, %v79_v7, %v62_v4 }
  0xfb   :  { %81 = vrot.lane.b32.xlu1 %v80_v8, %s148_s0 }
 0x101   :  { %v67_v11 = vpop.permute.xlu0 %66 }
 0x102   :  { %v68_v12 = vsel %vm65_vm2, %v67_v11, %v56_v5 }
 0x103   :  { %86 = vrot.lane.b32.xlu1 %v84_v10, %s150_s2  ;;  %69 = vrot.lane.b32.xlu2 %v68_v12, %s148_s0 }
 0x109   :  { %v92_v24 = vpop.permute.xlu0 %91 }
 0x10b   :  { %74 = vrot.lane.b32.xlu2 %v72_v13, %s149_s26 }
 0x113   :  { %102 = vperm.xlu2 %146, %v24_v14  }
 0x15d   :  { %v70_v20 = vpop.permute.xlu2 %69 }
 0x15e   :  { %v71_v22 = vsel %vm65_vm2, %v70_v20, %v56_v5 }
 0x165   :  { %v75_v21 = vpop.permute.xlu2 %74 }
 0x166   :  { %v77_v23 = vmul.f32 %v75_v21, %v71_v22 }
 0x168   :  { %v94_v25 = vadd.f32 %v92_v24, %v77_v23 }
 0x16d   :  { %v82_v16 = vpop.permute.xlu1 %81  ;;  %v103_v27 = vpop.permute.xlu2 %102 }
 0x16e   :  { %v83_v17 = vsel %vm65_vm2, %v82_v16, %v62_v4 }
 0x175   :  { %v87_v18 = vpop.permute.xlu1 %86 }
 0x176   :  { %v89_v19 = vmul.f32 %v87_v18, %v83_v17 }
 0x178   :  { %96 = vrot.lane.b32.xlu1 %v89_v19, %s152_s1 }
 0x1ea   :  { %v97_v26 = vpop.permute.xlu1 %96 }
 0x1eb   :  { %v99_v28 = vadd.f32 %v97_v26, %v94_v25 }
 0x1ed   :  { %v105_v29 = vadd.f32 %v103_v27, %v99_v28 }
 0x1ef   :  { %v106_v30 = vmax.f32 %v105_v29, 0.0 }
 0x1f1   :  { %v117_v31 = vmul.f32 %v106_v30, %v106_v30  ;;  %108 = vrot.lane.b32.xlu0 %v106_v30, %s153_s3 }
 0x1f3   :  { %119 = vrot.lane.b32.xlu1 %v117_v31, %s153_s3 }
 0x263   :  { %v109_v32 = vpop.permute.xlu0 %108 }
 0x264   :  { %v112_v33 = vsel %vm111_vm3, %v109_v32, 0.0 }
 0x265   :  { %113 = vadd.xlane.f32.xlu2 %v112_v33  ;;  %v120_v34 = vpop.permute.xlu1 %119 }
 0x266   :  { %v122_v35 = vsel %vm111_vm3, %v120_v34, 0.0 }
 0x267   :  { %123 = vadd.xlane.f32.xlu0 %v122_v35 }
 0x2d8   :  { %v114_v36 = vpop.xlane.xlu2 %113 }
 0x2d9   :  { %116 = vst.msk [vmem:[%s216_s4] sm:$0xff] %vm115_vm4, %v114_v36 }
 0x2da   :  { %v124_v37 = vpop.xlane.xlu0 %123 }
 0x2db   :  { %125 = vst.msk [vmem:[%s217_s5] sm:$0xff] %vm115_vm4, %v124_v37 }

</bundles_post_ra>
